<compile_context>
chip_gen: v5e
topology: v5e:2x2
jax: 0.10.0
libtpu: 0.0.40
codegen_flags: <defaults>
</compile_context>

<pallas_src>
import functools

import jax
import jax.numpy as jnp
from jax import lax
from jax.experimental import pallas as pl
from jax.experimental.pallas import tpu as pltpu


# --------------------------------------------------------------------------- #
# Kernel
# --------------------------------------------------------------------------- #
def _linear_kernel(x_ref, w_ref, b_ref, o_ref):
    # x_ref: (tm, K), w_ref: (tn, K), b_ref: (1, tn), o_ref: (tm, tn)
    # Contract the K axes directly (equivalent to x @ w.T) on the MXU with an
    # f32 accumulator; bias broadcast-add stays in f32 on the VPU.
    acc = lax.dot_general(
        x_ref[...],
        w_ref[...],
        dimension_numbers=(((1,), (1,)), ((), ())),
        preferred_element_type=jnp.float32,
    )
    acc = acc + b_ref[...].astype(jnp.float32)
    o_ref[...] = acc.astype(o_ref.dtype)


# --------------------------------------------------------------------------- #
# Static tiling logic (runs at trace time; shapes are static under jit)
# --------------------------------------------------------------------------- #
_VMEM_TILE_BUDGET = 24 * 1024 * 1024      # working-set budget for tile picking
_VMEM_LIMIT_BYTES = 48 * 1024 * 1024      # scoped VMEM limit (< v7x 64 MiB phys)


def _round_up(x: int, m: int) -> int:
    return ((x + m - 1) // m) * m


def _pick_tiles(M: int, N_pad: int, K: int, itemsize: int):
    # --- N tile: largest multiple-of-128 divisor of N_pad that keeps the
    #     (double-buffered) weight tile to ~1/3 of the budget.
    tn = 128
    for cand in (1024, 512, 256):
        if N_pad % cand == 0:
            tn = cand
            break
    while tn > 128 and 2 * tn * K * itemsize > _VMEM_TILE_BUDGET // 3:
        tn //= 2  # halving a divisor of N_pad stays a divisor (>= 128)

    # --- M tile: largest candidate whose total double-buffered footprint
    #     (x tile + weight tile + out tile + bias) fits the budget.
    tm = 8
    for cand in (2048, 1024, 512, 256, 128, 64, 32, 16, 8):
        need = itemsize * (2 * cand * K + 2 * tn * K + 2 * cand * tn + 2 * tn)
        if need <= _VMEM_TILE_BUDGET:
            tm = cand
            break

    # Don't pick a tile wildly bigger than the (sublane-padded) problem.
    tm = min(tm, max(8, _round_up(M, 8)))
    M_pad = _round_up(M, tm)

    # Prefer >= 2 row blocks when possible so v7x's two TensorCores both work.
    if M_pad // tm == 1 and tm >= 16 and (tm // 2) % 8 == 0:
        tm //= 2
        M_pad = _round_up(M, tm)

    return tm, tn, M_pad


# --------------------------------------------------------------------------- #
# Forward wrapper
# --------------------------------------------------------------------------- #
@jax.jit
def video_feat_encoder_forward(x, weight, bias):
    """x: (B, T, origin_dim); weight: (embed_dim, origin_dim); bias: (embed_dim,)."""
    B, T, K = x.shape
    N = weight.shape[0]
    M = B * T
    dtype = x.dtype
    itemsize = jnp.dtype(dtype).itemsize

    # Lane-dense output: pad N up to a multiple of 128.
    N_pad = _round_up(N, 128)
    tm, tn, M_pad = _pick_tiles(M, N_pad, K, itemsize)

    # --- prepare operands (pads are no-ops when already aligned) -------------
    x2d = x.reshape(M, K)
    if M_pad != M:
        x2d = jnp.pad(x2d, ((0, M_pad - M), (0, 0)))

    w = weight  # stays (N, K): no transpose materialized
    b = bias
    if N_pad != N:
        w = jnp.pad(w, ((0, N_pad - N), (0, 0)))
        b = jnp.pad(b, (0, N_pad - N))
    b2d = b.reshape(1, N_pad)

    grid = (M_pad // tm, N_pad // tn)

    cost = pl.CostEstimate(
        flops=2 * M_pad * K * N_pad,
        transcendentals=0,
        bytes_accessed=itemsize * (M_pad * K + N_pad * K + M_pad * N_pad + N_pad),
    )

    out2d = pl.pallas_call(
        _linear_kernel,
        out_shape=jax.ShapeDtypeStruct((M_pad, N_pad), dtype),
        grid_spec=pltpu.PrefetchScalarGridSpec(
            num_scalar_prefetch=0,
            grid=grid,
            in_specs=[
                pl.BlockSpec((tm, K), lambda i, j: (i, 0)),    # activation rows
                pl.BlockSpec((tn, K), lambda i, j: (j, 0)),    # weight (N,K) tile
                pl.BlockSpec((1, tn), lambda i, j: (0, j)),    # bias slice
            ],
            out_specs=pl.BlockSpec((tm, tn), lambda i, j: (i, j)),
        ),
        compiler_params=pltpu.CompilerParams(
            dimension_semantics=("parallel", "parallel"),
            vmem_limit_bytes=_VMEM_LIMIT_BYTES,
        ),
        cost_estimate=cost,
    )(x2d, w, b2d)

    # Strip padding (no-op slices when already aligned) and restore (B, T, N).
    return out2d[:M, :N].reshape(B, T, N)


# --------------------------------------------------------------------------- #
# Parameter init (mimics nn.Linear default: U(-1/sqrt(fan_in), 1/sqrt(fan_in)))
# --------------------------------------------------------------------------- #
def init_params(key, origin_dim, embed_dim, dtype=jnp.float32):
    kw, kb = jax.random.split(key)
    bound = 1.0 / (origin_dim ** 0.5)
    weight = jax.random.uniform(
        kw, (embed_dim, origin_dim), dtype=dtype, minval=-bound, maxval=bound
    )
    bias = jax.random.uniform(
        kb, (embed_dim,), dtype=dtype, minval=-bound, maxval=bound
    )
    return weight, bias


if __name__ == "__main__":
    key = jax.random.PRNGKey(0)
    k_x, k_p = jax.random.split(key)

    B, T = 2, 8          # batch, video seq length
    origin_dim = 32      # raw video feature dim
    embed_dim = 64       # target embedding dim

    x = jax.random.normal(k_x, (B, T, origin_dim), dtype=jnp.float32)
    weight, bias = init_params(k_p, origin_dim, embed_dim)

    y = video_feat_encoder_forward(x, weight, bias)
    y = jax.block_until_ready(y)

    # Correctness check against plain-JAX reference of the PyTorch semantics.
    y_ref = x @ weight.T + bias
    assert y.shape == (B, T, embed_dim)
    assert jnp.allclose(y, y_ref, atol=1e-5, rtol=1e-5)

    print("KERNEL_OK")
</pallas_src>

<mosaic_0001>
module attributes {stable_mosaic.version = 11 : i64} {
  func.func @_linear_kernel(%arg0: i32, %arg1: i32, %arg2: memref<8x32xf32, #tpu.memory_space<vmem>>, %arg3: memref<128x32xf32, #tpu.memory_space<vmem>>, %arg4: memref<1x128xf32, #tpu.memory_space<vmem>>, %arg5: memref<8x128xf32, #tpu.memory_space<vmem>>) attributes {dimension_semantics = [#tpu.dimension_semantics<parallel>, #tpu.dimension_semantics<parallel>], iteration_bounds = array<i64: 2, 1>, scalar_prefetch = 0 : i64, scratch_operands = 0 : i64, tpu.core_type = #tpu.core_type<tc>, window_params = [{transform_indices = @transform_0, window_bounds = array<i64: 8, 32>}, {transform_indices = @transform_1, window_bounds = array<i64: 128, 32>}, {transform_indices = @transform_2, window_bounds = array<i64: 1, 128>}, {transform_indices = @transform_3, window_bounds = array<i64: 8, 128>}]} {
    %c0 = arith.constant 0 : index
    %c0_0 = arith.constant 0 : index
    %0 = vector.load %arg2[%c0, %c0_0] : memref<8x32xf32, #tpu.memory_space<vmem>>, vector<8x32xf32>
    %c0_1 = arith.constant 0 : index
    %c0_2 = arith.constant 0 : index
    %1 = vector.load %arg3[%c0_1, %c0_2] : memref<128x32xf32, #tpu.memory_space<vmem>>, vector<128x32xf32>
    %cst = arith.constant dense<0.000000e+00> : vector<8x128xf32>
    %2 = tpu.matmul %0, %1, %cst {dimension_numbers = #tpu.dot_dimension_numbers<[1], [1], [0], [0], [0, 0, 1, 0], [], []>} : vector<8x32xf32>, vector<128x32xf32>, vector<8x128xf32> -> vector<8x128xf32>
    %c0_3 = arith.constant 0 : index
    %c0_4 = arith.constant 0 : index
    %3 = vector.load %arg4[%c0_3, %c0_4] : memref<1x128xf32, #tpu.memory_space<vmem>>, vector<1x128xf32>
    %4 = vector.broadcast %3 : vector<1x128xf32> to vector<8x128xf32>
    %5 = arith.addf %2, %4 : vector<8x128xf32>
    %c0_5 = arith.constant 0 : index
    %c0_6 = arith.constant 0 : index
    %6 = vector.load %arg5[%c0_5, %c0_6] : memref<8x128xf32, #tpu.memory_space<vmem>>, vector<8x128xf32>
    tpu.vector_store %arg5[%c0_5, %c0_6], %5 {strides = array<i32>} : memref<8x128xf32, #tpu.memory_space<vmem>>, vector<8x128xf32>,
    return
  }
  func.func @transform_0(%arg0: i32, %arg1: i32) -> (i32, i32) {
    %c0_i32 = arith.constant 0 : i32
    %c0_i32_0 = arith.constant 0 : i32
    return %arg0, %c0_i32 : i32, i32
  }
  func.func @transform_1(%arg0: i32, %arg1: i32) -> (i32, i32) {
    %c0_i32 = arith.constant 0 : i32
    %c0_i32_0 = arith.constant 0 : i32
    return %arg1, %c0_i32 : i32, i32
  }
  func.func @transform_2(%arg0: i32, %arg1: i32) -> (i32, i32) {
    %c0_i32 = arith.constant 0 : i32
    %c0_i32_0 = arith.constant 0 : i32
    return %c0_i32, %arg1 : i32, i32
  }
  func.func @transform_3(%arg0: i32, %arg1: i32) -> (i32, i32) {
    %c0_i32 = arith.constant 0 : i32
    return %arg0, %arg1 : i32, i32
  }
}

</mosaic_0001>

<bundles_post_ra>
// kernel: video_feat_encoder_forward.1
= control target key start
LH: loop header
LB: loop body
LE: loop exit
PB: predicated region body
PF: predicated region fallthrough
CT: control target
= control target key end

     0   :  { %s512_s12 = smov 0   ;;  %s514_s13 = smov 0   ;;  %s617_s0 = inlined_call_operand.vmem [shape: f32[16,32], index: 0, kind: input, shape index: {}]   ;;  %s618_s1 = inlined_call_operand.vmem [shape: f32[128,32], index: 1, kind: input, shape index: {}]   ;;  %s619_s2 = inlined_call_operand.vmem [shape: f32[1,128], index: 2, kind: input, shape index: {}]   ;;  %s620_s3 = inlined_call_operand.vmem [shape: f32[16,128], index: 3, kind: output, shape index: {}]  }
   0x1   :  { %s516_s14 = smov 0  }
   0x2 LB: > { %s25_s15 = sadd.s32 1, %s486_s13  ;;  %p421_p0 = scmp.ge.s32.totalorder %s490_s14, 1  ;;  %s490_s14 = sphi %s516_s14, %s13_s14   ;;  %s486_s13 = sphi %s514_s13, %s622_s13   ;;  %s482_s12 = sphi %s512_s12, %s621_s12  }
   0x3   : > { %p27_p1 = scmp.ge.s32.totalorder %s25_s15, 2  ;;  %p169_p2 = scmp.lt.s32.totalorder %s490_s14, 3 }
   0x5   : > { %s624_s15 = smov (%p27_p1, %s25_s15), 0  ;;  %p170_p3 = pnand %p421_p0, %p169_p2 }
   0x6   : > { %p202_p4 = scmp.lt.s32.totalorder (!%p170_p3), %s482_s12, 1 }
   0x7   : > { %173 = sbr.rel (%p170_p3) target bundleno = 205 (0xcd), region = 32 }
   0xc   : > { %v238_v0 = vld [vmem:[%s618_s1 + $0x78] sm:$0xff]  ;;  %vm243_vm0 = vcmask 261120   ;;  %v237_v1 = vld [vmem:[%s618_s1 + $0x70] sm:$0xff]  ;;  %v236_v2 = vld [vmem:[%s618_s1 + $0x68] sm:$0xff]  ;;  %s626_s12 = smov (!%p202_p4, %s482_s12), 1 }
   0xd   : > { %424 = vmatpush.xpose.msk.msra.mxu0 %vm243_vm0, %v238_v0  ;;  %v235_v3 = vld [vmem:[%s618_s1 + $0x60] sm:$0xff]  ;;  %v234_v4 = vld [vmem:[%s618_s1 + $0x58] sm:$0xff]  ;;  %v233_v5 = vld [vmem:[%s618_s1 + $0x50] sm:$0xff]  ;;  %s422_s23 = sshll.u32 %s626_s12, 3 }
   0xe   : > { %v232_v6 = vld [vmem:[%s618_s1 + $0x48] sm:$0xff]  ;;  %v231_v7 = vld [vmem:[%s618_s1 + $0x40] sm:$0xff]  ;;  %v230_v8 = vld [vmem:[%s618_s1 + $0x38] sm:$0xff]  ;;  %s205_s28 = scalar_lea.vmem %s617_s0, %s422_s23  ;;  %s221_s5 = scalar_lea.vmem %s620_s3, %s422_s23 }
   0xf   : > { %v229_v9 = vld [vmem:[%s618_s1 + $0x30] sm:$0xff]  ;;  %v228_v10 = vld [vmem:[%s618_s1 + $0x28] sm:$0xff]  ;;  %v227_v11 = vld [vmem:[%s618_s1 + $0x20] sm:$0xff] }
  0x10   : > { %v226_v12 = vld [vmem:[%s618_s1 + $0x18] sm:$0xff]  ;;  %v225_v13 = vld [vmem:[%s618_s1 + $0x10] sm:$0xff]  ;;  %v224_v14 = vld [vmem:[%s618_s1 + $0x8] sm:$0xff] }
  0x11   : > { %425 = vmatpush.xpose.msk.msra.mxu0 %vm243_vm0, %v237_v1  ;;  %v223_v15 = vld [vmem:[%s618_s1] sm:$0xff] }
  0x12   : > { %v222_v16 = vld [vmem:[%s205_s28] sm:$0xff] }
  0x13   : > { %v467_v17 = vld [vmem:[%s619_s2] ss:$0 sm:$0xff] }
  0x15   : > { %426 = vmatpush.xpose.msk.msra.mxu0 %vm243_vm0, %v236_v2 }
  0x19   : > { %427 = vmatpush.xpose.msk.msra.mxu0 %vm243_vm0, %v235_v3 }
  0x1d   : > { %428 = vmatpush.xpose.msk.msra.mxu0 %vm243_vm0, %v234_v4 }
  0x21   : > { %429 = vmatpush.xpose.msk.msra.mxu0 %vm243_vm0, %v233_v5 }
  0x25   : > { %430 = vmatpush.xpose.msk.msra.mxu0 %vm243_vm0, %v232_v6 }
  0x29   : > { %431 = vmatpush.xpose.msk.msra.mxu0 %vm243_vm0, %v231_v7 }
  0x2d   : > { %432 = vmatpush.xpose.msk.msra.mxu0 %vm243_vm0, %v230_v8 }
  0x31   : > { %433 = vmatpush.xpose.msk.msra.mxu0 %vm243_vm0, %v229_v9 }
  0x35   : > { %434 = vmatpush.xpose.msk.msra.mxu0 %vm243_vm0, %v228_v10 }
  0x39   : > { %435 = vmatpush.xpose.msk.msra.mxu0 %vm243_vm0, %v227_v11 }
  0x3d   : > { %436 = vmatpush.xpose.msk.msra.mxu0 %vm243_vm0, %v226_v12 }
  0x41   : > { %437 = vmatpush.xpose.msk.msra.mxu0 %vm243_vm0, %v225_v13 }
  0x45   : > { %438 = vmatpush.xpose.msk.msra.mxu0 %vm243_vm0, %v224_v14 }
  0x49   : > { %439 = vmatpush.xpose.msk.msra.mxu0 %vm243_vm0, %v223_v15 }
  0x4c   : > { %440 = vmatmul.msk.f32.vlgmr.msra.gmra.mxu0 %vm243_vm0, %v222_v16 }
  0xc9   : > { %v312_v18 = vpop.f32.mrf.mxu0 }
  0xca   : > { %v313_v19 = vadd.f32 %v467_v17, %v312_v18 }
  0xcc   : > { %315 = vst [vmem:[%s221_s5] sm:$0xff] %v313_v19 }
  0xcd PF: > { %s13_s14 = sadd.s32 1, %s490_s14   ;;  %s621_s12 = smov %s486_s13 }
  0xce   : > { %p10_p5 = scmp.ge.s32.totalorder %s13_s14, 4   ;;  %s622_s13 = smov %s624_s15 }
  0xd0   :  { %12 = sbr.rel (!%p10_p5) target bundleno = 2 (0x2), region = 68 }

</bundles_post_ra>
